<compile_context>
chip_gen: v5e
topology: v5e:2x2
jax: 0.10.0
libtpu: 0.0.40
codegen_flags: <defaults>
</compile_context>

<pallas_src>
import functools

import jax
import jax.numpy as jnp
from jax.experimental import pallas as pl
from jax.experimental.pallas import tpu as pltpu

LANE = 128
SUBLANE = 8


def _dice_partial_sums_kernel(p_ref, t_ref, out_ref, acc_pt, acc_den, *,
                              tm, bpc, num_full_blocks, rem, multicore):
    """Accumulates per-core partial sums of sigmoid(p)*t and sigmoid(p)+t."""
    if multicore:
        c = pl.program_id(0)            # CORE_PARALLEL axis (one TC per value)
        i = pl.program_id(1)            # reduction step within this core
        blk = c * bpc + i               # logical block index (small, no overflow)
        last = pl.num_programs(1) - 1
    else:
        i = pl.program_id(0)
        blk = i
        last = pl.num_programs(0) - 1

    @pl.when(i == 0)
    def _():
        acc_pt[...] = jnp.zeros_like(acc_pt)
        acc_den[...] = jnp.zeros_like(acc_den)

    pv = p_ref[...].astype(jnp.float32)
    tv = t_ref[...].astype(jnp.float32)
    # sigmoid(x) = 0.5*tanh(0.5*x) + 0.5 : one EUP transcendental + 2 VPU ops.
    s = 0.5 * jnp.tanh(0.5 * pv) + 0.5

    def fold(x):
        # (tm, LANE) -> (SUBLANE, LANE): pure VPU vreg adds, no cross-lane XLU.
        return jnp.sum(x.reshape(tm // SUBLANE, SUBLANE, LANE), axis=0)

    # Hot path: fully-valid blocks.  Single scalar compare against a
    # compile-time constant; no per-tile element-offset arithmetic.
    @pl.when(blk < num_full_blocks)
    def _():
        acc_pt[...] += fold(s * tv)
        acc_den[...] += fold(s + tv)

    if rem > 0:
        # Exactly one ragged block exists (blk == num_full_blocks); `rem` is a
        # compile-time constant.  Clamped duplicate blocks on the last core
        # have blk > num_full_blocks and contribute nothing.
        @pl.when(blk == num_full_blocks)
        def _():
            row = jax.lax.broadcasted_iota(jnp.int32, (tm, LANE), 0)
            col = jax.lax.broadcasted_iota(jnp.int32, (tm, LANE), 1)
            local_idx = row * LANE + col
            valid = local_idx < rem
            zero = jnp.float32(0.0)
            acc_pt[...] += fold(jnp.where(valid, s * tv, zero))
            acc_den[...] += fold(jnp.where(valid, s + tv, zero))

    @pl.when(i == last)
    def _():
        # Single cross-lane XLU reduce + SMEM scalar write per core.
        out_ref[0, 0] = jnp.sum(acc_pt[...])
        out_ref[0, 1] = jnp.sum(acc_den[...])


def _default_num_cores():
    # v7x has 2 TensorCores per chip; v5e/v6e have 1 (leading axis would just
    # be a wasted serial loop there).
    try:
        kind = jax.devices()[0].device_kind.lower()
    except Exception:
        return 1
    return 2 if "7" in kind else 1


def dice_loss(preds, targets, smooth=1e-6, tm=4096, num_cores=None,
              vmem_limit_bytes=None):
    """Matches DiceLoss.forward: 1 - (2*sum(sig(p)*t)+s)/(sum(sig(p))+sum(t)+s).

    Inputs may be any dtype (f32/bf16 preds, f32/bool/int targets); the f32
    cast happens inside the kernel so HBM traffic stays at the native width.
    """
    assert preds.shape == targets.shape
    n = preds.size

    p_flat = preds.reshape(-1)
    t_flat = targets.reshape(-1)

    n_main = (n // LANE) * LANE
    if n_main == 0:
        # Fewer than one lane row: plain JAX is the right tool.
        s = jax.nn.sigmoid(p_flat.astype(jnp.float32))
        tvec = t_flat.astype(jnp.float32)
        num = 2.0 * jnp.sum(s * tvec) + smooth
        den = jnp.sum(s) + jnp.sum(tvec) + smooth
        return 1.0 - num / den

    tail_pt = jnp.float32(0.0)
    tail_den = jnp.float32(0.0)
    if n_main != n:
        # <128-element residual: tiny plain-JAX correction instead of padding
        # (and re-copying) the whole flat tensor.  The common aligned case
        # (n % 128 == 0) touches neither branch and stays zero-copy.
        pt = p_flat[n_main:].astype(jnp.float32)
        tt = t_flat[n_main:].astype(jnp.float32)
        st = jax.nn.sigmoid(pt)
        tail_pt = jnp.sum(st * tt)
        tail_den = jnp.sum(st) + jnp.sum(tt)
        p_flat = p_flat[:n_main]
        t_flat = t_flat[:n_main]

    rows = n_main // LANE
    p2 = p_flat.reshape(rows, LANE)
    t2 = t_flat.reshape(rows, LANE)

    # Tile: multiple of SUBLANE rows, capped by the (sublane-rounded) row count.
    rows_padded = ((rows + SUBLANE - 1) // SUBLANE) * SUBLANE
    tm_eff = max(SUBLANE, min((tm // SUBLANE) * SUBLANE, rows_padded))
    nblocks = pl.cdiv(rows, tm_eff)

    # Compile-time constants for in-kernel validity checks (no int32 overflow:
    # only block indices, never element offsets, are compared at runtime).
    block_elems = tm_eff * LANE
    num_full_blocks = n_main // block_elems
    rem = n_main - num_full_blocks * block_elems
    # NOTE: n_main is the *valid* (unpadded) element count of the kernel input;
    # never substitute a padded length here (padded zeros would contribute
    # sigmoid(0)=0.5 to the denominator).

    if num_cores is None:
        num_cores = _default_num_cores()
    ncores = max(1, min(int(num_cores), nblocks))
    multicore = ncores > 1
    bpc = pl.cdiv(nblocks, ncores)        # blocks per core

    kernel = functools.partial(
        _dice_partial_sums_kernel, tm=tm_eff, bpc=bpc,
        num_full_blocks=num_full_blocks, rem=rem, multicore=multicore)

    if multicore:
        # Real 2-TC split (v7x): CORE_PARALLEL on the leading axis.  A core
        # whose logical block range overshoots nblocks re-reads the last block;
        # the kernel masks it out entirely (blk > num_full_blocks).
        grid = (ncores, bpc)

        def in_map(c, i):
            return (jnp.minimum(c * bpc + i, nblocks - 1), 0)

        out_map = lambda c, i: (c, 0)
        dims = (pltpu.CORE_PARALLEL, pltpu.ARBITRARY)
    else:
        grid = (nblocks,)
        in_map = lambda i: (i, 0)
        out_map = lambda i: (0, 0)
        dims = (pltpu.ARBITRARY,)

    cp_kwargs = dict(dimension_semantics=dims)
    if vmem_limit_bytes is not None:
        cp_kwargs["vmem_limit_bytes"] = vmem_limit_bytes

    partials = pl.pallas_call(
        kernel,
        out_shape=jax.ShapeDtypeStruct((ncores, 2), jnp.float32),
        grid=grid,
        in_specs=[
            pl.BlockSpec((tm_eff, LANE), in_map),
            pl.BlockSpec((tm_eff, LANE), in_map),
        ],
        out_specs=pl.BlockSpec((1, 2), out_map,
                               memory_space=pltpu.MemorySpace.SMEM),
        scratch_shapes=[pltpu.VMEM((SUBLANE, LANE), jnp.float32)] * 2,
        compiler_params=pltpu.CompilerParams(**cp_kwargs),
    )(p2, t2)

    sums = jnp.sum(partials, axis=0)
    sum_pt = sums[0] + tail_pt            # sum(sigmoid(p) * t)
    sum_den = sums[1] + tail_den          # sum(sigmoid(p)) + sum(t)
    numerator = 2.0 * sum_pt + smooth
    denominator = sum_den + smooth
    return 1.0 - numerator / denominator


def _reference(preds, targets, smooth=1e-6):
    s = jax.nn.sigmoid(preds.astype(jnp.float32))
    t = targets.astype(jnp.float32)
    numerator = 2.0 * jnp.sum(s * t) + smooth
    denominator = jnp.sum(s) + jnp.sum(t) + smooth
    return 1.0 - numerator / denominator


if __name__ == "__main__":
    key = jax.random.PRNGKey(0)
    kp, kt = jax.random.split(key)

    # NCHW-shaped logits / binary targets, as the autoencoder's forward implies.
    B, C, H, W = 2, 4, 16, 16
    preds = jax.random.normal(kp, (B, C, H, W), dtype=jnp.float32)
    targets = (jax.random.uniform(kt, (B, C, H, W)) < 0.1).astype(jnp.float32)

    loss = dice_loss(preds, targets, smooth=1e-6)
    loss = jax.block_until_ready(loss)

    ref = _reference(preds, targets, smooth=1e-6)
    assert jnp.allclose(loss, ref, rtol=1e-5, atol=1e-5), (loss, ref)

    print("KERNEL_OK")
</pallas_src>

<mosaic_0001>
module attributes {stable_mosaic.version = 11 : i64} {
  func.func @_dice_partial_sums_kernel(%arg0: i32, %arg1: memref<16x128xf32, #tpu.memory_space<vmem>>, %arg2: memref<16x128xf32, #tpu.memory_space<vmem>>, %arg3: memref<1x2xf32, #tpu.memory_space<smem>>, %arg4: memref<8x128xf32, #tpu.memory_space<vmem>>, %arg5: memref<8x128xf32, #tpu.memory_space<vmem>>) attributes {dimension_semantics = [#tpu.dimension_semantics<arbitrary>], iteration_bounds = array<i64: 1>, scalar_prefetch = 0 : i64, scratch_operands = 2 : i64, tpu.core_type = #tpu.core_type<tc>, window_params = [{transform_indices = @transform_0, window_bounds = array<i64: 16, 128>}, {transform_indices = @transform_1, window_bounds = array<i64: 16, 128>}, {transform_indices = @transform_2, window_bounds = array<i64: 1, 2>}]} {
    %c0_i32 = arith.constant 0 : i32
    %0 = arith.cmpi eq, %arg0, %c0_i32 : i32
    %1 = arith.extui %0 : i1 to i32
    %c0_i32_0 = arith.constant 0 : i32
    %2 = arith.cmpi ne, %1, %c0_i32_0 : i32
    scf.if %2 {
      %cst_9 = arith.constant 0.000000e+00 : f32
      %18 = vector.broadcast %cst_9 : f32 to vector<8x128xf32>
      %c0_10 = arith.constant 0 : index
      %c0_11 = arith.constant 0 : index
      %19 = vector.load %arg4[%c0_10, %c0_11] : memref<8x128xf32, #tpu.memory_space<vmem>>, vector<8x128xf32>
      tpu.vector_store %arg4[%c0_10, %c0_11], %18 {strides = array<i32>} : memref<8x128xf32, #tpu.memory_space<vmem>>, vector<8x128xf32>,
      %cst_12 = arith.constant 0.000000e+00 : f32
      %20 = vector.broadcast %cst_12 : f32 to vector<8x128xf32>
      %c0_13 = arith.constant 0 : index
      %c0_14 = arith.constant 0 : index
      %21 = vector.load %arg5[%c0_13, %c0_14] : memref<8x128xf32, #tpu.memory_space<vmem>>, vector<8x128xf32>
      tpu.vector_store %arg5[%c0_13, %c0_14], %20 {strides = array<i32>} : memref<8x128xf32, #tpu.memory_space<vmem>>, vector<8x128xf32>,
    } else {
    }
    %c0 = arith.constant 0 : index
    %c0_1 = arith.constant 0 : index
    %3 = vector.load %arg1[%c0, %c0_1] : memref<16x128xf32, #tpu.memory_space<vmem>>, vector<16x128xf32>
    %c0_2 = arith.constant 0 : index
    %c0_3 = arith.constant 0 : index
    %4 = vector.load %arg2[%c0_2, %c0_3] : memref<16x128xf32, #tpu.memory_space<vmem>>, vector<16x128xf32>
    %cst = arith.constant 5.000000e-01 : f32
    %5 = vector.broadcast %cst : f32 to vector<16x128xf32>
    %6 = arith.mulf %5, %3 : vector<16x128xf32>
    %7 = math.tanh %6 : vector<16x128xf32>
    %cst_4 = arith.constant 5.000000e-01 : f32
    %8 = vector.broadcast %cst_4 : f32 to vector<16x128xf32>
    %9 = arith.mulf %8, %7 : vector<16x128xf32>
    %cst_5 = arith.constant 5.000000e-01 : f32
    %10 = vector.broadcast %cst_5 : f32 to vector<16x128xf32>
    %11 = arith.addf %9, %10 : vector<16x128xf32>
    %c1_i32 = arith.constant 1 : i32
    %12 = arith.cmpi slt, %arg0, %c1_i32 : i32
    %13 = arith.extui %12 : i1 to i32
    %c0_i32_6 = arith.constant 0 : i32
    %14 = arith.cmpi ne, %13, %c0_i32_6 : i32
    scf.if %14 {
      %c0_9 = arith.constant 0 : index
      %c0_10 = arith.constant 0 : index
      %18 = vector.load %arg4[%c0_9, %c0_10] : memref<8x128xf32, #tpu.memory_space<vmem>>, vector<8x128xf32>
      %19 = arith.mulf %11, %4 : vector<16x128xf32>
      %20 = vector.shape_cast %19 : vector<16x128xf32> to vector<2x8x128xf32>
      %cst_11 = arith.constant dense<0.000000e+00> : vector<8x128xf32>
      %21 = vector.multi_reduction <add>, %20, %cst_11 [0] : vector<2x8x128xf32> to vector<8x128xf32>
      %22 = arith.addf %18, %21 : vector<8x128xf32>
      %c0_12 = arith.constant 0 : index
      %c0_13 = arith.constant 0 : index
      %23 = vector.load %arg4[%c0_12, %c0_13] : memref<8x128xf32, #tpu.memory_space<vmem>>, vector<8x128xf32>
      tpu.vector_store %arg4[%c0_12, %c0_13], %22 {strides = array<i32>} : memref<8x128xf32, #tpu.memory_space<vmem>>, vector<8x128xf32>,
      %c0_14 = arith.constant 0 : index
      %c0_15 = arith.constant 0 : index
      %24 = vector.load %arg5[%c0_14, %c0_15] : memref<8x128xf32, #tpu.memory_space<vmem>>, vector<8x128xf32>
      %25 = arith.addf %11, %4 : vector<16x128xf32>
      %26 = vector.shape_cast %25 : vector<16x128xf32> to vector<2x8x128xf32>
      %cst_16 = arith.constant dense<0.000000e+00> : vector<8x128xf32>
      %27 = vector.multi_reduction <add>, %26, %cst_16 [0] : vector<2x8x128xf32> to vector<8x128xf32>
      %28 = arith.addf %24, %27 : vector<8x128xf32>
      %c0_17 = arith.constant 0 : index
      %c0_18 = arith.constant 0 : index
      %29 = vector.load %arg5[%c0_17, %c0_18] : memref<8x128xf32, #tpu.memory_space<vmem>>, vector<8x128xf32>
      tpu.vector_store %arg5[%c0_17, %c0_18], %28 {strides = array<i32>} : memref<8x128xf32, #tpu.memory_space<vmem>>, vector<8x128xf32>,
    } else {
    }
    %c0_i32_7 = arith.constant 0 : i32
    %15 = arith.cmpi eq, %arg0, %c0_i32_7 : i32
    %16 = arith.extui %15 : i1 to i32
    %c0_i32_8 = arith.constant 0 : i32
    %17 = arith.cmpi ne, %16, %c0_i32_8 : i32
    scf.if %17 {
      %c0_9 = arith.constant 0 : index
      %c0_10 = arith.constant 0 : index
      %18 = vector.load %arg4[%c0_9, %c0_10] : memref<8x128xf32, #tpu.memory_space<vmem>>, vector<8x128xf32>
      %19 = vector.shape_cast %18 : vector<8x128xf32> to vector<1x8x128xf32>
      %cst_11 = arith.constant dense<0.000000e+00> : vector<1xf32>
      %20 = vector.multi_reduction <add>, %19, %cst_11 [1, 2] : vector<1x8x128xf32> to vector<1xf32>
      %21 = vector.shape_cast %20 : vector<1xf32> to vector<1x1x1xf32>
      %22 = vector.extract %21[0, 0, 0] : f32 from vector<1x1x1xf32>
      %c0_12 = arith.constant 0 : index
      %c0_13 = arith.constant 0 : index
      %23 = memref.load %arg3[%c0_12, %c0_13] : memref<1x2xf32, #tpu.memory_space<smem>>
      memref.store %22, %arg3[%c0_12, %c0_13] : memref<1x2xf32, #tpu.memory_space<smem>>
      %c0_14 = arith.constant 0 : index
      %c0_15 = arith.constant 0 : index
      %24 = vector.load %arg5[%c0_14, %c0_15] : memref<8x128xf32, #tpu.memory_space<vmem>>, vector<8x128xf32>
      %25 = vector.shape_cast %24 : vector<8x128xf32> to vector<1x8x128xf32>
      %cst_16 = arith.constant dense<0.000000e+00> : vector<1xf32>
      %26 = vector.multi_reduction <add>, %25, %cst_16 [1, 2] : vector<1x8x128xf32> to vector<1xf32>
      %27 = vector.shape_cast %26 : vector<1xf32> to vector<1x1x1xf32>
      %28 = vector.extract %27[0, 0, 0] : f32 from vector<1x1x1xf32>
      %c0_17 = arith.constant 0 : index
      %c1 = arith.constant 1 : index
      %29 = memref.load %arg3[%c0_17, %c1] : memref<1x2xf32, #tpu.memory_space<smem>>
      memref.store %28, %arg3[%c0_17, %c1] : memref<1x2xf32, #tpu.memory_space<smem>>
    } else {
    }
    return
  }
  func.func @transform_0(%arg0: i32) -> (i32, i32) {
    %c0_i32 = arith.constant 0 : i32
    %c0_i32_0 = arith.constant 0 : i32
    return %arg0, %c0_i32 : i32, i32
  }
  func.func @transform_1(%arg0: i32) -> (i32, i32) {
    %c0_i32 = arith.constant 0 : i32
    %c0_i32_0 = arith.constant 0 : i32
    return %arg0, %c0_i32 : i32, i32
  }
  func.func @transform_2(%arg0: i32) -> (i32, i32) {
    %c0_i32 = arith.constant 0 : i32
    %c0_i32_0 = arith.constant 0 : i32
    %c0_i32_1 = arith.constant 0 : i32
    return %c0_i32, %c0_i32_0 : i32, i32
  }
}

</mosaic_0001>

<bundles_post_ra>
// kernel: tpu_custom_call.1
= control target key start
LH: loop header
LB: loop body
LE: loop exit
PB: predicated region body
PF: predicated region fallthrough
CT: control target
= control target key end

     0   :  { %7 = vsyncpa [#allocation5], 0  ;;  %s230_s0 = inlined_call_operand.hbm [shape: f32[16,128], index: 0, kind: input, shape index: {}]   ;;  %s231_s1 = inlined_call_operand.hbm [shape: f32[16,128], index: 1, kind: input, shape index: {}]   ;;  %s232_s2 = inlined_call_operand.hbm [shape: f32[1,2], index: 2, kind: output, shape index: {}]  }
   0x1   :  { %8 = vsyncpa [#allocation8], 0 }
   0x2   :  { %9 = vsyncpa [#allocation6], 0  ;;  %s14_s11 = sshll.u32 %s230_s0, 4  ;;  %s201_s12 = smov [#allocation4]   ;;  %s15_s11 = int_to_ptr.hbm [resolvable:$true] %s14_s11 }
   0x3   :  { %s16_s13 = sshll.u32 %s201_s12, 4  ;;  %s27_s16 = sshll.u32 %s231_s1, 4  ;;  %s17_s13 = int_to_ptr.vmem [resolvable:$true] %s16_s13  ;;  %s28_s16 = int_to_ptr.hbm [resolvable:$true] %s27_s16 }
   0x4   :  { %s202_s17 = smov 128   ;;  %s203_s18 = smov 8  }
   0x5   :  { %22 = dma.hbm_to_vmem [thread:$0]  %s15_s11, 256, %s17_s13, [#allocation5], %s202_s17, %s202_s17, %s203_s18  }
   0x6   :  { %s204_s19 = smov [#allocation7]  }
   0x7   :  { %s29_s20 = sshll.u32 %s204_s19, 4  ;;  %s30_s20 = int_to_ptr.vmem [resolvable:$true] %s29_s20 }
   0x8   :  { %35 = dma.hbm_to_vmem [thread:$0]  %s28_s16, 256, %s30_s20, [#allocation8], %s202_s17, %s202_s17, %s203_s18  }
   0x9   :  { %195 = dma.done.wait [#allocation5], 256  }
   0xa   :  { %196 = vsyncadd [#allocation5], 4294967040 }
   0xb   :  { %197 = dma.done.wait [#allocation8], 256  }
   0xc   :  { %198 = vsyncadd [#allocation8], 4294967040  ;;  %v50_v0 = vld [vmem:[#allocation4] sm:$0xff]  ;;  %v51_v1 = vld [vmem:[#allocation4 + $0x8] sm:$0xff]  ;;  %s110_s22 = sshll.u32 %s232_s2, 4  ;;  %s205_s24 = smov [#allocation9]   ;;  %s111_s22 = int_to_ptr.hbm [resolvable:$true] %s110_s22 }
   0xd   :  { %v54_v2 = vmul.f32 0.5, %v50_v0  ;;  %v55_v3 = vmul.f32 0.5, %v51_v1  ;;  %v52_v7 = vld [vmem:[#allocation7] sm:$0xff]  ;;  %v53_v9 = vld [vmem:[#allocation7 + $0x8] sm:$0xff] }
   0xf   :  { %131 = vtanh.f32 %v54_v2 }
  0x10   :  { %133 = vtanh.f32 %v55_v3 }
  0x15   :  { %v132_v4 = vpop.eup %131 }
  0x16   :  { %v134_v5 = vpop.eup %133  ;;  %v58_v6 = vmul.f32 0.5, %v132_v4 }
  0x17   :  { %v59_v8 = vmul.f32 0.5, %v134_v5 }
  0x18   :  { %v60_v10 = vadd.f32 0.5, %v58_v6 }
  0x19   :  { %v61_v11 = vadd.f32 0.5, %v59_v8 }
  0x1a   :  { %v67_v12 = vmul.f32 %v60_v10, %v52_v7  ;;  %v73_v15 = vadd.f32 %v60_v10, %v52_v7 }
  0x1b   :  { %v68_v13 = vmul.f32 %v61_v11, %v53_v9  ;;  %v74_v16 = vadd.f32 %v61_v11, %v53_v9 }
  0x1d   :  { %v69_v14 = vadd.f32 %v68_v13, %v67_v12  ;;  %v75_v17 = vadd.f32 %v74_v16, %v73_v15 }
  0x1f   :  { %82 = vadd.xlane.f32.xlu0 %v69_v14 }
  0x27   :  { %94 = vadd.xlane.f32.xlu0 %v75_v17 }
  0x92   :  { %v83_v18 = vpop.xlane.xlu0 %82 }
  0x93   :  { %v84_v19 = vrot.slane %v83_v18, 4 }
  0x95   :  { %v85_v20 = vadd.f32 %v84_v19, %v83_v18 }
  0x97   :  { %v86_v21 = vrot.slane %v85_v20, 2 }
  0x99   :  { %v87_v22 = vadd.f32 %v86_v21, %v85_v20 }
  0x9a   :  { %v95_v23 = vpop.xlane.xlu0 %94 }
  0x9b   :  { %v96_v24 = vrot.slane %v95_v23, 4  ;;  %v88_v25 = vrot.slane %v87_v22, 1 }
  0x9d   :  { %v97_v26 = vadd.f32 %v96_v24, %v95_v23  ;;  %v89_v27 = vadd.f32 %v88_v25, %v87_v22 }
  0x9f   :  { %v98_v28 = vrot.slane %v97_v26, 2  ;;  %122 = vpush %v89_v27 }
  0xa1   :  { %v99_v29 = vadd.f32 %v98_v28, %v97_v26 }
  0xa3   :  { %v100_v30 = vrot.slane %v99_v29, 1 }
  0xa5   :  { %v101_v31 = vadd.f32 %v100_v30, %v99_v29 }
  0xa7   :  { %124 = vpush %v101_v31 }
  0xd0   :  { %s123_s0 = spop %122 }
  0xd1   :  { %92 = sst [smem:[#allocation9]] %s123_s0 }
  0xd8   :  { %s125_s23 = spop %124 }
  0xd9   :  { %104 = sst [smem:[#allocation9 + $0x1]] %s125_s23 }
  0xda   :  { %113 = dma.smem_to_hbm %s205_s24, 16, %s111_s22, [#allocation6]  }
  0xdb   :  { %199 = dma.done.wait [#allocation6], 16  }
  0xdc   :  { %200 = vsyncadd [#allocation6], 4294967280 }
  0xdd   :  { %118 = sfence }
  0xde   :  { %119 = vsyncpa [#allocation5], 1 }
  0xdf   :  { %120 = vsyncpa [#allocation8], 1 }
  0xe0   :  { %121 = vsyncpa [#allocation6], 1 }

</bundles_post_ra>
